<compile_context>
chip_gen: v7x
topology: tpu7x:2x2x1
jax: 0.10.0
libtpu: 0.0.40
codegen_flags: <defaults>
</compile_context>

<pallas_src>
import jax
import jax.numpy as jnp
from jax.experimental import pallas as pl
from jax.experimental.pallas import tpu as pltpu


# ---------------------------------------------------------------------------
# Kernel
# ---------------------------------------------------------------------------
def resnet_kernel(
    x_ref,        # (TB, IN_p)      f32
    w1_ref,       # (IN_p, H_p)     bf16
    b1_ref,       # (1, H_p)        f32
    rb_wa_ref,    # (4, H_p, H_p)   bf16  residual fc1 weights (transposed)
    rb_ba_ref,    # (4, 1, H_p)     f32   residual fc1 biases
    rb_wb_ref,    # (4, H_p, H_p)   bf16  residual fc2 weights (transposed)
    rb_bb_ref,    # (4, 1, H_p)     f32   residual fc2 biases
    w2_ref,       # (H_p, C_p)      bf16
    b2_ref,       # (1, C_p)        f32
    out_ref,      # (TB, C_p)       f32
):
    def mxu(a_f32, w_bf16):
        # bf16 operands, f32 accumulation.
        return jnp.dot(a_f32.astype(jnp.bfloat16), w_bf16,
                       preferred_element_type=jnp.float32)

    # fc1 + (eval-mode) dropout
    h = mxu(x_ref[...], w1_ref[...]) + b1_ref[...]

    # 4 residual blocks: out = fc2(dropout(leaky_relu(fc1(x)))) + x
    for i in range(4):                       # fully unrolled on purpose
        residual = h
        t = mxu(h, rb_wa_ref[i]) + rb_ba_ref[i]
        t = jnp.where(t > 0, t, 0.01 * t)    # LeakyReLU(0.01), f32 on VPU
        # dropout (eval mode) == identity
        t = mxu(t, rb_wb_ref[i]) + rb_bb_ref[i]
        h = t + residual

    # final fc2
    out_ref[...] = (mxu(h, w2_ref[...]) + b2_ref[...]).astype(out_ref.dtype)


# ---------------------------------------------------------------------------
# Wrapper
# ---------------------------------------------------------------------------
def _round_up(n, m):
    return ((n + m - 1) // m) * m


def _pad_axis(a, axis, target):
    pad = target - a.shape[axis]
    if pad == 0:
        return a
    widths = [(0, 0)] * a.ndim
    widths[axis] = (0, pad)
    return jnp.pad(a, widths)


def _resident_spec(shape):
    """Full-array BlockSpec with a constant index map (weight stays in VMEM).

    Arity is captured via a default arg -> no late-binding bug.
    """
    zeros = (0,) * len(shape)
    return pl.BlockSpec(shape, lambda i, _z=zeros: _z)


def multi_dimensional_resnet(x, params, *, batch_tile=256):
    """x: (B, input_size) float32.  params: dict of pre-transposed weights."""
    B, IN = x.shape
    H = params["w1"].shape[1]
    C = params["w2"].shape[1]

    # Lane-aligned (multiple-of-128) feature dims; zero padding is exact.
    IN_p = _round_up(IN, 128)
    H_p = _round_up(H, 128)
    C_p = _round_up(C, 128)

    # Batch tile: big tiles when B is large, otherwise one sublane-aligned tile.
    TB = batch_tile if B >= batch_tile else _round_up(B, 8)
    B_p = _round_up(B, TB)
    grid = (B_p // TB,)

    x_p = _pad_axis(_pad_axis(x, 1, IN_p), 0, B_p)
    w1 = _pad_axis(_pad_axis(params["w1"], 0, IN_p), 1, H_p)
    b1 = _pad_axis(params["b1"], 1, H_p)
    rb_wa = _pad_axis(_pad_axis(params["rb_wa"], 1, H_p), 2, H_p)
    rb_ba = _pad_axis(params["rb_ba"], 2, H_p)
    rb_wb = _pad_axis(_pad_axis(params["rb_wb"], 1, H_p), 2, H_p)
    rb_bb = _pad_axis(params["rb_bb"], 2, H_p)
    w2 = _pad_axis(_pad_axis(params["w2"], 0, H_p), 1, C_p)
    b2 = _pad_axis(params["b2"], 1, C_p)

    operands = (x_p, w1, b1, rb_wa, rb_ba, rb_wb, rb_bb, w2, b2)

    in_specs = [pl.BlockSpec((TB, IN_p), lambda i: (i, 0))]            # x: batch-tiled
    in_specs += [_resident_spec(op.shape) for op in operands[1:]]      # weights resident
    out_specs = pl.BlockSpec((TB, C_p), lambda i: (i, 0))

    flops = 2 * B_p * (IN_p * H_p + 8 * H_p * H_p + H_p * C_p)
    bytes_accessed = (
        sum(int(op.size) * op.dtype.itemsize for op in operands)
        + B_p * C_p * x.dtype.itemsize
    )

    out_padded = pl.pallas_call(
        resnet_kernel,
        out_shape=jax.ShapeDtypeStruct((B_p, C_p), x.dtype),
        grid=grid,
        in_specs=in_specs,
        out_specs=out_specs,
        compiler_params=pltpu.CompilerParams(
            dimension_semantics=("parallel",),
            vmem_limit_bytes=64 * 1024 * 1024,
        ),
        cost_estimate=pl.CostEstimate(
            flops=flops, transcendentals=0, bytes_accessed=bytes_accessed
        ),
    )(*operands)

    return out_padded[:B, :C]


# ---------------------------------------------------------------------------
# Params (PyTorch nn.Linear-style init; weights stored pre-transposed, bf16)
# ---------------------------------------------------------------------------
def init_params(key, input_size, hidden_size, num_classes):
    keys = jax.random.split(key, 20)

    def linear(kw, kb, fan_in, fan_out):
        bound = 1.0 / jnp.sqrt(fan_in)
        # PyTorch stores W as (out, in); we keep the transposed (in, out) form.
        w = jax.random.uniform(kw, (fan_in, fan_out), jnp.float32, -bound, bound)
        b = jax.random.uniform(kb, (1, fan_out), jnp.float32, -bound, bound)
        return w.astype(jnp.bfloat16), b   # bf16 weights, f32 biases

    w1, b1 = linear(keys[0], keys[1], input_size, hidden_size)
    w2, b2 = linear(keys[2], keys[3], hidden_size, num_classes)

    rb_wa, rb_ba, rb_wb, rb_bb = [], [], [], []
    for i in range(4):                      # independent keys, no reuse
        wa, ba = linear(keys[4 + 4 * i], keys[5 + 4 * i], hidden_size, hidden_size)
        wb, bb = linear(keys[6 + 4 * i], keys[7 + 4 * i], hidden_size, hidden_size)
        rb_wa.append(wa)
        rb_ba.append(ba[None])
        rb_wb.append(wb)
        rb_bb.append(bb[None])

    return {
        "w1": w1, "b1": b1,
        "rb_wa": jnp.stack(rb_wa), "rb_ba": jnp.concatenate(rb_ba, axis=0),
        "rb_wb": jnp.stack(rb_wb), "rb_bb": jnp.concatenate(rb_bb, axis=0),
        "w2": w2, "b2": b2,
    }


# ---------------------------------------------------------------------------
# Pure-JAX reference (same bf16-operand / f32-accumulate numerics)
# ---------------------------------------------------------------------------
def reference_forward(x, p):
    def mxu(a, w):
        return jnp.dot(a.astype(jnp.bfloat16), w,
                       preferred_element_type=jnp.float32)

    h = mxu(x, p["w1"]) + p["b1"]
    for i in range(4):
        r = h
        t = mxu(h, p["rb_wa"][i]) + p["rb_ba"][i]
        t = jnp.where(t > 0, t, 0.01 * t)
        t = mxu(t, p["rb_wb"][i]) + p["rb_bb"][i]
        h = t + r
    return mxu(h, p["w2"]) + p["b2"]


if __name__ == "__main__":
    input_size, hidden_size, num_classes = 16, 32, 8
    batch = 8

    key = jax.random.PRNGKey(0)
    k_x, k_p = jax.random.split(key)
    x = jax.random.normal(k_x, (batch, input_size), jnp.float32)
    params = init_params(k_p, input_size, hidden_size, num_classes)

    out = multi_dimensional_resnet(x, params)
    out = jax.block_until_ready(out)

    ref = reference_forward(x, params)
    assert out.shape == (batch, num_classes)
    assert jnp.allclose(out, ref, atol=1e-2, rtol=1e-2), (
        f"max abs err {jnp.max(jnp.abs(out - ref))}"
    )

    print("KERNEL_OK")
</pallas_src>

<mosaic_0001>
module attributes {stable_mosaic.version = 11 : i64} {
  func.func @resnet_kernel(%arg0: i32, %arg1: memref<8x128xf32, #tpu.memory_space<vmem>>, %arg2: memref<128x128xbf16, #tpu.memory_space<vmem>>, %arg3: memref<1x128xf32, #tpu.memory_space<vmem>>, %arg4: memref<4x128x128xbf16, #tpu.memory_space<vmem>>, %arg5: memref<4x1x128xf32, #tpu.memory_space<vmem>>, %arg6: memref<4x128x128xbf16, #tpu.memory_space<vmem>>, %arg7: memref<4x1x128xf32, #tpu.memory_space<vmem>>, %arg8: memref<128x128xbf16, #tpu.memory_space<vmem>>, %arg9: memref<1x128xf32, #tpu.memory_space<vmem>>, %arg10: memref<8x128xf32, #tpu.memory_space<vmem>>) attributes {dimension_semantics = [#tpu.dimension_semantics<parallel>], iteration_bounds = array<i64: 1>, scalar_prefetch = 0 : i64, scratch_operands = 0 : i64, tpu.core_type = #tpu.core_type<tc>, window_params = [{transform_indices = @transform_0, window_bounds = array<i64: 8, 128>}, {pipeline_mode = #tpu.pipeline_mode<synchronous>, transform_indices = @transform_1, window_bounds = array<i64: 128, 128>}, {pipeline_mode = #tpu.pipeline_mode<synchronous>, transform_indices = @transform_2, window_bounds = array<i64: 1, 128>}, {pipeline_mode = #tpu.pipeline_mode<synchronous>, transform_indices = @transform_3, window_bounds = array<i64: 4, 128, 128>}, {pipeline_mode = #tpu.pipeline_mode<synchronous>, transform_indices = @transform_4, window_bounds = array<i64: 4, 1, 128>}, {pipeline_mode = #tpu.pipeline_mode<synchronous>, transform_indices = @transform_5, window_bounds = array<i64: 4, 128, 128>}, {pipeline_mode = #tpu.pipeline_mode<synchronous>, transform_indices = @transform_6, window_bounds = array<i64: 4, 1, 128>}, {pipeline_mode = #tpu.pipeline_mode<synchronous>, transform_indices = @transform_7, window_bounds = array<i64: 128, 128>}, {pipeline_mode = #tpu.pipeline_mode<synchronous>, transform_indices = @transform_8, window_bounds = array<i64: 1, 128>}, {transform_indices = @transform_9, window_bounds = array<i64: 8, 128>}]} {
    %c0 = arith.constant 0 : index
    %c0_0 = arith.constant 0 : index
    %0 = vector.load %arg1[%c0, %c0_0] : memref<8x128xf32, #tpu.memory_space<vmem>>, vector<8x128xf32>
    %c0_1 = arith.constant 0 : index
    %c0_2 = arith.constant 0 : index
    %1 = vector.load %arg2[%c0_1, %c0_2] : memref<128x128xbf16, #tpu.memory_space<vmem>>, vector<128x128xbf16>
    %2 = arith.truncf %0 : vector<8x128xf32> to vector<8x128xbf16>
    %cst = arith.constant dense<0.000000e+00> : vector<8x128xf32>
    %3 = tpu.matmul %2, %1, %cst {dimension_numbers = #tpu.dot_dimension_numbers<[1], [0], [0], [1], [0, 0, 1, 1], [], []>} : vector<8x128xbf16>, vector<128x128xbf16>, vector<8x128xf32> -> vector<8x128xf32>
    %c0_3 = arith.constant 0 : index
    %c0_4 = arith.constant 0 : index
    %4 = vector.load %arg3[%c0_3, %c0_4] : memref<1x128xf32, #tpu.memory_space<vmem>>, vector<1x128xf32>
    %5 = vector.broadcast %4 : vector<1x128xf32> to vector<8x128xf32>
    %6 = arith.addf %3, %5 : vector<8x128xf32>
    %c0_5 = arith.constant 0 : index
    %c0_6 = arith.constant 0 : index
    %c0_7 = arith.constant 0 : index
    %7 = vector.load %arg4[%c0_5, %c0_6, %c0_7] : memref<4x128x128xbf16, #tpu.memory_space<vmem>>, vector<1x128x128xbf16>
    %8 = vector.shape_cast %7 : vector<1x128x128xbf16> to vector<128x128xbf16>
    %9 = arith.truncf %6 : vector<8x128xf32> to vector<8x128xbf16>
    %cst_8 = arith.constant dense<0.000000e+00> : vector<8x128xf32>
    %10 = tpu.matmul %9, %8, %cst_8 {dimension_numbers = #tpu.dot_dimension_numbers<[1], [0], [0], [1], [0, 0, 1, 1], [], []>} : vector<8x128xbf16>, vector<128x128xbf16>, vector<8x128xf32> -> vector<8x128xf32>
    %c0_9 = arith.constant 0 : index
    %c0_10 = arith.constant 0 : index
    %c0_11 = arith.constant 0 : index
    %11 = vector.load %arg5[%c0_9, %c0_10, %c0_11] : memref<4x1x128xf32, #tpu.memory_space<vmem>>, vector<1x1x128xf32>
    %12 = vector.shape_cast %11 : vector<1x1x128xf32> to vector<1x128xf32>
    %13 = vector.broadcast %12 : vector<1x128xf32> to vector<8x128xf32>
    %14 = arith.addf %10, %13 : vector<8x128xf32>
    %cst_12 = arith.constant 0.000000e+00 : f32
    %15 = vector.broadcast %cst_12 : f32 to vector<8x128xf32>
    %16 = arith.cmpf ogt, %14, %15 : vector<8x128xf32>
    %cst_13 = arith.constant 0.00999999977 : f32
    %17 = vector.broadcast %cst_13 : f32 to vector<8x128xf32>
    %18 = arith.mulf %17, %14 : vector<8x128xf32>
    %19 = arith.select %16, %14, %18 : vector<8x128xi1>, vector<8x128xf32>
    %c0_14 = arith.constant 0 : index
    %c0_15 = arith.constant 0 : index
    %c0_16 = arith.constant 0 : index
    %20 = vector.load %arg6[%c0_14, %c0_15, %c0_16] : memref<4x128x128xbf16, #tpu.memory_space<vmem>>, vector<1x128x128xbf16>
    %21 = vector.shape_cast %20 : vector<1x128x128xbf16> to vector<128x128xbf16>
    %22 = arith.truncf %19 : vector<8x128xf32> to vector<8x128xbf16>
    %cst_17 = arith.constant dense<0.000000e+00> : vector<8x128xf32>
    %23 = tpu.matmul %22, %21, %cst_17 {dimension_numbers = #tpu.dot_dimension_numbers<[1], [0], [0], [1], [0, 0, 1, 1], [], []>} : vector<8x128xbf16>, vector<128x128xbf16>, vector<8x128xf32> -> vector<8x128xf32>
    %c0_18 = arith.constant 0 : index
    %c0_19 = arith.constant 0 : index
    %c0_20 = arith.constant 0 : index
    %24 = vector.load %arg7[%c0_18, %c0_19, %c0_20] : memref<4x1x128xf32, #tpu.memory_space<vmem>>, vector<1x1x128xf32>
    %25 = vector.shape_cast %24 : vector<1x1x128xf32> to vector<1x128xf32>
    %26 = vector.broadcast %25 : vector<1x128xf32> to vector<8x128xf32>
    %27 = arith.addf %23, %26 : vector<8x128xf32>
    %28 = arith.addf %27, %6 : vector<8x128xf32>
    %c1 = arith.constant 1 : index
    %c0_21 = arith.constant 0 : index
    %c0_22 = arith.constant 0 : index
    %29 = vector.load %arg4[%c1, %c0_21, %c0_22] : memref<4x128x128xbf16, #tpu.memory_space<vmem>>, vector<1x128x128xbf16>
    %30 = vector.shape_cast %29 : vector<1x128x128xbf16> to vector<128x128xbf16>
    %31 = arith.truncf %28 : vector<8x128xf32> to vector<8x128xbf16>
    %cst_23 = arith.constant dense<0.000000e+00> : vector<8x128xf32>
    %32 = tpu.matmul %31, %30, %cst_23 {dimension_numbers = #tpu.dot_dimension_numbers<[1], [0], [0], [1], [0, 0, 1, 1], [], []>} : vector<8x128xbf16>, vector<128x128xbf16>, vector<8x128xf32> -> vector<8x128xf32>
    %c1_24 = arith.constant 1 : index
    %c0_25 = arith.constant 0 : index
    %c0_26 = arith.constant 0 : index
    %33 = vector.load %arg5[%c1_24, %c0_25, %c0_26] : memref<4x1x128xf32, #tpu.memory_space<vmem>>, vector<1x1x128xf32>
    %34 = vector.shape_cast %33 : vector<1x1x128xf32> to vector<1x128xf32>
    %35 = vector.broadcast %34 : vector<1x128xf32> to vector<8x128xf32>
    %36 = arith.addf %32, %35 : vector<8x128xf32>
    %cst_27 = arith.constant 0.000000e+00 : f32
    %37 = vector.broadcast %cst_27 : f32 to vector<8x128xf32>
    %38 = arith.cmpf ogt, %36, %37 : vector<8x128xf32>
    %cst_28 = arith.constant 0.00999999977 : f32
    %39 = vector.broadcast %cst_28 : f32 to vector<8x128xf32>
    %40 = arith.mulf %39, %36 : vector<8x128xf32>
    %41 = arith.select %38, %36, %40 : vector<8x128xi1>, vector<8x128xf32>
    %c1_29 = arith.constant 1 : index
    %c0_30 = arith.constant 0 : index
    %c0_31 = arith.constant 0 : index
    %42 = vector.load %arg6[%c1_29, %c0_30, %c0_31] : memref<4x128x128xbf16, #tpu.memory_space<vmem>>, vector<1x128x128xbf16>
    %43 = vector.shape_cast %42 : vector<1x128x128xbf16> to vector<128x128xbf16>
    %44 = arith.truncf %41 : vector<8x128xf32> to vector<8x128xbf16>
    %cst_32 = arith.constant dense<0.000000e+00> : vector<8x128xf32>
    %45 = tpu.matmul %44, %43, %cst_32 {dimension_numbers = #tpu.dot_dimension_numbers<[1], [0], [0], [1], [0, 0, 1, 1], [], []>} : vector<8x128xbf16>, vector<128x128xbf16>, vector<8x128xf32> -> vector<8x128xf32>
    %c1_33 = arith.constant 1 : index
    %c0_34 = arith.constant 0 : index
    %c0_35 = arith.constant 0 : index
    %46 = vector.load %arg7[%c1_33, %c0_34, %c0_35] : memref<4x1x128xf32, #tpu.memory_space<vmem>>, vector<1x1x128xf32>
    %47 = vector.shape_cast %46 : vector<1x1x128xf32> to vector<1x128xf32>
    %48 = vector.broadcast %47 : vector<1x128xf32> to vector<8x128xf32>
    %49 = arith.addf %45, %48 : vector<8x128xf32>
    %50 = arith.addf %49, %28 : vector<8x128xf32>
    %c2 = arith.constant 2 : index
    %c0_36 = arith.constant 0 : index
    %c0_37 = arith.constant 0 : index
    %51 = vector.load %arg4[%c2, %c0_36, %c0_37] : memref<4x128x128xbf16, #tpu.memory_space<vmem>>, vector<1x128x128xbf16>
    %52 = vector.shape_cast %51 : vector<1x128x128xbf16> to vector<128x128xbf16>
    %53 = arith.truncf %50 : vector<8x128xf32> to vector<8x128xbf16>
    %cst_38 = arith.constant dense<0.000000e+00> : vector<8x128xf32>
    %54 = tpu.matmul %53, %52, %cst_38 {dimension_numbers = #tpu.dot_dimension_numbers<[1], [0], [0], [1], [0, 0, 1, 1], [], []>} : vector<8x128xbf16>, vector<128x128xbf16>, vector<8x128xf32> -> vector<8x128xf32>
    %c2_39 = arith.constant 2 : index
    %c0_40 = arith.constant 0 : index
    %c0_41 = arith.constant 0 : index
    %55 = vector.load %arg5[%c2_39, %c0_40, %c0_41] : memref<4x1x128xf32, #tpu.memory_space<vmem>>, vector<1x1x128xf32>
    %56 = vector.shape_cast %55 : vector<1x1x128xf32> to vector<1x128xf32>
    %57 = vector.broadcast %56 : vector<1x128xf32> to vector<8x128xf32>
    %58 = arith.addf %54, %57 : vector<8x128xf32>
    %cst_42 = arith.constant 0.000000e+00 : f32
    %59 = vector.broadcast %cst_42 : f32 to vector<8x128xf32>
    %60 = arith.cmpf ogt, %58, %59 : vector<8x128xf32>
    %cst_43 = arith.constant 0.00999999977 : f32
    %61 = vector.broadcast %cst_43 : f32 to vector<8x128xf32>
    %62 = arith.mulf %61, %58 : vector<8x128xf32>
    %63 = arith.select %60, %58, %62 : vector<8x128xi1>, vector<8x128xf32>
    %c2_44 = arith.constant 2 : index
    %c0_45 = arith.constant 0 : index
    %c0_46 = arith.constant 0 : index
    %64 = vector.load %arg6[%c2_44, %c0_45, %c0_46] : memref<4x128x128xbf16, #tpu.memory_space<vmem>>, vector<1x128x128xbf16>
    %65 = vector.shape_cast %64 : vector<1x128x128xbf16> to vector<128x128xbf16>
    %66 = arith.truncf %63 : vector<8x128xf32> to vector<8x128xbf16>
    %cst_47 = arith.constant dense<0.000000e+00> : vector<8x128xf32>
    %67 = tpu.matmul %66, %65, %cst_47 {dimension_numbers = #tpu.dot_dimension_numbers<[1], [0], [0], [1], [0, 0, 1, 1], [], []>} : vector<8x128xbf16>, vector<128x128xbf16>, vector<8x128xf32> -> vector<8x128xf32>
    %c2_48 = arith.constant 2 : index
    %c0_49 = arith.constant 0 : index
    %c0_50 = arith.constant 0 : index
    %68 = vector.load %arg7[%c2_48, %c0_49, %c0_50] : memref<4x1x128xf32, #tpu.memory_space<vmem>>, vector<1x1x128xf32>
    %69 = vector.shape_cast %68 : vector<1x1x128xf32> to vector<1x128xf32>
    %70 = vector.broadcast %69 : vector<1x128xf32> to vector<8x128xf32>
    %71 = arith.addf %67, %70 : vector<8x128xf32>
    %72 = arith.addf %71, %50 : vector<8x128xf32>
    %c3 = arith.constant 3 : index
    %c0_51 = arith.constant 0 : index
    %c0_52 = arith.constant 0 : index
    %73 = vector.load %arg4[%c3, %c0_51, %c0_52] : memref<4x128x128xbf16, #tpu.memory_space<vmem>>, vector<1x128x128xbf16>
    %74 = vector.shape_cast %73 : vector<1x128x128xbf16> to vector<128x128xbf16>
    %75 = arith.truncf %72 : vector<8x128xf32> to vector<8x128xbf16>
    %cst_53 = arith.constant dense<0.000000e+00> : vector<8x128xf32>
    %76 = tpu.matmul %75, %74, %cst_53 {dimension_numbers = #tpu.dot_dimension_numbers<[1], [0], [0], [1], [0, 0, 1, 1], [], []>} : vector<8x128xbf16>, vector<128x128xbf16>, vector<8x128xf32> -> vector<8x128xf32>
    %c3_54 = arith.constant 3 : index
    %c0_55 = arith.constant 0 : index
    %c0_56 = arith.constant 0 : index
    %77 = vector.load %arg5[%c3_54, %c0_55, %c0_56] : memref<4x1x128xf32, #tpu.memory_space<vmem>>, vector<1x1x128xf32>
    %78 = vector.shape_cast %77 : vector<1x1x128xf32> to vector<1x128xf32>
    %79 = vector.broadcast %78 : vector<1x128xf32> to vector<8x128xf32>
    %80 = arith.addf %76, %79 : vector<8x128xf32>
    %cst_57 = arith.constant 0.000000e+00 : f32
    %81 = vector.broadcast %cst_57 : f32 to vector<8x128xf32>
    %82 = arith.cmpf ogt, %80, %81 : vector<8x128xf32>
    %cst_58 = arith.constant 0.00999999977 : f32
    %83 = vector.broadcast %cst_58 : f32 to vector<8x128xf32>
    %84 = arith.mulf %83, %80 : vector<8x128xf32>
    %85 = arith.select %82, %80, %84 : vector<8x128xi1>, vector<8x128xf32>
    %c3_59 = arith.constant 3 : index
    %c0_60 = arith.constant 0 : index
    %c0_61 = arith.constant 0 : index
    %86 = vector.load %arg6[%c3_59, %c0_60, %c0_61] : memref<4x128x128xbf16, #tpu.memory_space<vmem>>, vector<1x128x128xbf16>
    %87 = vector.shape_cast %86 : vector<1x128x128xbf16> to vector<128x128xbf16>
    %88 = arith.truncf %85 : vector<8x128xf32> to vector<8x128xbf16>
    %cst_62 = arith.constant dense<0.000000e+00> : vector<8x128xf32>
    %89 = tpu.matmul %88, %87, %cst_62 {dimension_numbers = #tpu.dot_dimension_numbers<[1], [0], [0], [1], [0, 0, 1, 1], [], []>} : vector<8x128xbf16>, vector<128x128xbf16>, vector<8x128xf32> -> vector<8x128xf32>
    %c3_63 = arith.constant 3 : index
    %c0_64 = arith.constant 0 : index
    %c0_65 = arith.constant 0 : index
    %90 = vector.load %arg7[%c3_63, %c0_64, %c0_65] : memref<4x1x128xf32, #tpu.memory_space<vmem>>, vector<1x1x128xf32>
    %91 = vector.shape_cast %90 : vector<1x1x128xf32> to vector<1x128xf32>
    %92 = vector.broadcast %91 : vector<1x128xf32> to vector<8x128xf32>
    %93 = arith.addf %89, %92 : vector<8x128xf32>
    %94 = arith.addf %93, %72 : vector<8x128xf32>
    %c0_66 = arith.constant 0 : index
    %c0_67 = arith.constant 0 : index
    %95 = vector.load %arg8[%c0_66, %c0_67] : memref<128x128xbf16, #tpu.memory_space<vmem>>, vector<128x128xbf16>
    %96 = arith.truncf %94 : vector<8x128xf32> to vector<8x128xbf16>
    %cst_68 = arith.constant dense<0.000000e+00> : vector<8x128xf32>
    %97 = tpu.matmul %96, %95, %cst_68 {dimension_numbers = #tpu.dot_dimension_numbers<[1], [0], [0], [1], [0, 0, 1, 1], [], []>} : vector<8x128xbf16>, vector<128x128xbf16>, vector<8x128xf32> -> vector<8x128xf32>
    %c0_69 = arith.constant 0 : index
    %c0_70 = arith.constant 0 : index
    %98 = vector.load %arg9[%c0_69, %c0_70] : memref<1x128xf32, #tpu.memory_space<vmem>>, vector<1x128xf32>
    %99 = vector.broadcast %98 : vector<1x128xf32> to vector<8x128xf32>
    %100 = arith.addf %97, %99 : vector<8x128xf32>
    %c0_71 = arith.constant 0 : index
    %c0_72 = arith.constant 0 : index
    %101 = vector.load %arg10[%c0_71, %c0_72] : memref<8x128xf32, #tpu.memory_space<vmem>>, vector<8x128xf32>
    tpu.vector_store %arg10[%c0_71, %c0_72], %100 {strides = array<i32>} : memref<8x128xf32, #tpu.memory_space<vmem>>, vector<8x128xf32>,
    return
  }
  func.func @transform_0(%arg0: i32) -> (i32, i32) {
    %c0_i32 = arith.constant 0 : i32
    %c0_i32_0 = arith.constant 0 : i32
    return %arg0, %c0_i32 : i32, i32
  }
  func.func @transform_1(%arg0: i32) -> (i32, i32) {
    %c0_i32 = arith.constant 0 : i32
    %c0_i32_0 = arith.constant 0 : i32
    %c0_i32_1 = arith.constant 0 : i32
    return %c0_i32, %c0_i32_0 : i32, i32
  }
  func.func @transform_2(%arg0: i32) -> (i32, i32) {
    %c0_i32 = arith.constant 0 : i32
    %c0_i32_0 = arith.constant 0 : i32
    %c0_i32_1 = arith.constant 0 : i32
    return %c0_i32, %c0_i32_0 : i32, i32
  }
  func.func @transform_3(%arg0: i32) -> (i32, i32, i32) {
    %c0_i32 = arith.constant 0 : i32
    %c0_i32_0 = arith.constant 0 : i32
    %c0_i32_1 = arith.constant 0 : i32
    %c0_i32_2 = arith.constant 0 : i32
    return %c0_i32, %c0_i32_0, %c0_i32_1 : i32, i32, i32
  }
  func.func @transform_4(%arg0: i32) -> (i32, i32, i32) {
    %c0_i32 = arith.constant 0 : i32
    %c0_i32_0 = arith.constant 0 : i32
    %c0_i32_1 = arith.constant 0 : i32
    %c0_i32_2 = arith.constant 0 : i32
    return %c0_i32, %c0_i32_0, %c0_i32_1 : i32, i32, i32
  }
  func.func @transform_5(%arg0: i32) -> (i32, i32, i32) {
    %c0_i32 = arith.constant 0 : i32
    %c0_i32_0 = arith.constant 0 : i32
    %c0_i32_1 = arith.constant 0 : i32
    %c0_i32_2 = arith.constant 0 : i32
    return %c0_i32, %c0_i32_0, %c0_i32_1 : i32, i32, i32
  }
  func.func @transform_6(%arg0: i32) -> (i32, i32, i32) {
    %c0_i32 = arith.constant 0 : i32
    %c0_i32_0 = arith.constant 0 : i32
    %c0_i32_1 = arith.constant 0 : i32
    %c0_i32_2 = arith.constant 0 : i32
    return %c0_i32, %c0_i32_0, %c0_i32_1 : i32, i32, i32
  }
  func.func @transform_7(%arg0: i32) -> (i32, i32) {
    %c0_i32 = arith.constant 0 : i32
    %c0_i32_0 = arith.constant 0 : i32
    %c0_i32_1 = arith.constant 0 : i32
    return %c0_i32, %c0_i32_0 : i32, i32
  }
  func.func @transform_8(%arg0: i32) -> (i32, i32) {
    %c0_i32 = arith.constant 0 : i32
    %c0_i32_0 = arith.constant 0 : i32
    %c0_i32_1 = arith.constant 0 : i32
    return %c0_i32, %c0_i32_0 : i32, i32
  }
  func.func @transform_9(%arg0: i32) -> (i32, i32) {
    %c0_i32 = arith.constant 0 : i32
    %c0_i32_0 = arith.constant 0 : i32
    return %arg0, %c0_i32 : i32, i32
  }
}

</mosaic_0001>

<bundles_post_ra>
// kernel: tpu_custom_call.1
= control target key start
LH: loop header
LB: loop body
LE: loop exit
PB: predicated region body
PF: predicated region fallthrough
CT: control target
= control target key end

     0   :  { %14 = vsyncpa [#allocation3], 0  ;;  %s2340_s0 = inlined_call_operand.hbm [shape: f32[8,128], index: 0, kind: input, shape index: {}]   ;;  %s2341_s1 = inlined_call_operand.hbm [shape: bf16[128,128], index: 1, kind: input, shape index: {}]   ;;  %s2342_s2 = inlined_call_operand.hbm [shape: f32[1,128], index: 2, kind: input, shape index: {}]   ;;  %s2343_s3 = inlined_call_operand.hbm [shape: bf16[4,128,128], index: 3, kind: input, shape index: {}]   ;;  %s2344_s4 = inlined_call_operand.hbm [shape: f32[4,1,128], index: 4, kind: input, shape index: {}]   ;;  %s2345_s5 = inlined_call_operand.hbm [shape: bf16[4,128,128], index: 5, kind: input, shape index: {}]   ;;  %s2346_s6 = inlined_call_operand.hbm [shape: f32[4,1,128], index: 6, kind: input, shape index: {}]   ;;  %s2347_s7 = inlined_call_operand.hbm [shape: bf16[128,128], index: 7, kind: input, shape index: {}]   ;;  %s2348_s8 = inlined_call_operand.hbm [shape: f32[1,128], index: 8, kind: input, shape index: {}]   ;;  %s2349_s9 = inlined_call_operand.hbm [shape: f32[8,128], index: 9, kind: output, shape index: {}]  }
   0x1   :  { %15 = vsyncpa [#allocation6], 0 }
   0x2   :  { %16 = vsyncpa [#allocation9], 0 }
   0x3   :  { %17 = vsyncpa [#allocation12], 0 }
   0x4   :  { %18 = vsyncpa [#allocation15], 0 }
   0x5   :  { %19 = vsyncpa [#allocation4], 0  ;;  %s2027_s30 = smov [#allocation5]   ;;  %s1795_s13 = scalar_lea.hbm %s2341_s1, 1024 }
   0x6   :  { %s35_s10 = sshll.u32 %s2027_s30, 4  ;;  %p1796_p0 = scmp.ne.s32.totalorder %s2341_s1, %s1795_s13  ;;  %s36_s10 = int_to_ptr.vmem [resolvable:$true] %s35_s10 }
   0x7   :  { %p1799_p1 = scmp.lt.u32.totalorder %s1795_s13, %s2341_s1 }
   0x9   :  { %p1801_p2 = pnand %p1799_p1, %p1796_p0 }
   0xb   :  { %1804 = shalt.err (!%p1801_p2)
}
   0xc   :  { %s1805_s18 = scalar_lea.vmem %s36_s10, 1024  ;;  %p1810_p4 = scmp.lt.s32.totalorder %s36_s10, %s36_s10 }
   0xd   :  { %p1806_p3 = scmp.ne.s32.totalorder %s36_s10, %s1805_s18  ;;  %p1811_p5 = scmp.lt.s32.totalorder %s1805_s18, %s1805_s18 }
   0xf   :  { %p1812_p6 = por %p1811_p5, %p1810_p4 }
  0x11   :  { %p1813_p7 = pnand %p1812_p6, %p1806_p3 }
  0x13   :  { %1816 = shalt.err (!%p1813_p7)
}
  0x14   :  { %s2028_s19 = smov 64   ;;  %s2029_s20 = smov 4  }
  0x15   :  { %41 = dma.hbm_to_vmem [thread:$0]  %s2341_s1, 1024, %s36_s10, [#allocation6], %s2028_s19, %s2028_s19, %s2029_s20  }
  0x16   :  { %s2030_s23 = smov [#allocation8]   ;;  %s2031_s25 = smov [#allocation11]  }
  0x17   :  { %s57_s24 = sshll.u32 %s2030_s23, 4  ;;  %s81_s26 = sshll.u32 %s2031_s25, 4  ;;  %s58_s24 = int_to_ptr.vmem [resolvable:$true] %s57_s24  ;;  %s82_s26 = int_to_ptr.vmem [resolvable:$true] %s81_s26 }
  0x18   :  { %s1817_s29 = scalar_lea.hbm %s2343_s3, 4096 }
  0x19   :  { %p1818_p8 = scmp.ne.s32.totalorder %s2343_s3, %s1817_s29  ;;  %p1821_p9 = scmp.lt.u32.totalorder %s1817_s29, %s2343_s3 }
  0x1b   :  { %p1823_p10 = pnand %p1821_p9, %p1818_p8 }
  0x1d   :  { %1826 = shalt.err (!%p1823_p10)
}
  0x1e   :  { %s1827_s1 = scalar_lea.vmem %s58_s24, 4096  ;;  %p1832_p12 = scmp.lt.s32.totalorder %s58_s24, %s58_s24 }
  0x1f   :  { %p1828_p11 = scmp.ne.s32.totalorder %s58_s24, %s1827_s1  ;;  %p1833_p13 = scmp.lt.s32.totalorder %s1827_s1, %s1827_s1 }
  0x21   :  { %p1834_p0 = por %p1833_p13, %p1832_p12 }
  0x23   :  { %p1835_p1 = pnand %p1834_p0, %p1828_p11 }
  0x25   :  { %1838 = shalt.err (!%p1835_p1)
}
  0x26   :  { %63 = dma.hbm_to_vmem [thread:$0]  %s2343_s3, 4096, %s58_s24, [#allocation9], %s2028_s19, %s2028_s19, %s2029_s20  }
  0x27   :  { %s1839_s17 = scalar_lea.hbm %s2345_s5, 4096 }
  0x28   :  { %p1840_p2 = scmp.ne.s32.totalorder %s2345_s5, %s1839_s17  ;;  %p1843_p3 = scmp.lt.u32.totalorder %s1839_s17, %s2345_s5 }
  0x2a   :  { %p1845_p4 = pnand %p1843_p3, %p1840_p2 }
  0x2c   :  { %1848 = shalt.err (!%p1845_p4)
}
  0x2d   :  { %s1849_s25 = scalar_lea.vmem %s82_s26, 4096  ;;  %p1854_p6 = scmp.lt.s32.totalorder %s82_s26, %s82_s26 }
  0x2e   :  { %p1850_p5 = scmp.ne.s32.totalorder %s82_s26, %s1849_s25  ;;  %p1855_p7 = scmp.lt.s32.totalorder %s1849_s25, %s1849_s25 }
  0x30   :  { %p1856_p8 = por %p1855_p7, %p1854_p6 }
  0x32   :  { %p1857_p9 = pnand %p1856_p8, %p1850_p5 }
  0x34   :  { %1860 = shalt.err (!%p1857_p9)
}
  0x35   :  { %87 = dma.hbm_to_vmem [thread:$0]  %s2345_s5, 4096, %s82_s26, [#allocation12], %s2028_s19, %s2028_s19, %s2029_s20  }
  0x36   :  { %s2032_s27 = smov [#allocation14]   ;;  %s2033_s29 = smov [#allocation2]  }
  0x37   :  { %s105_s28 = sshll.u32 %s2032_s27, 4  ;;  %s26_s30 = sshll.u32 %s2033_s29, 4  ;;  %s106_s28 = int_to_ptr.vmem [resolvable:$true] %s105_s28  ;;  %s27_s30 = int_to_ptr.vmem [resolvable:$true] %s26_s30 }
  0x38   :  { %s1861_s13 = scalar_lea.hbm %s2347_s7, 1024 }
  0x39   :  { %p1862_p10 = scmp.ne.s32.totalorder %s2347_s7, %s1861_s13  ;;  %p1865_p11 = scmp.lt.u32.totalorder %s1861_s13, %s2347_s7 }
  0x3b   :  { %p1867_p12 = pnand %p1865_p11, %p1862_p10 }
  0x3d   :  { %1870 = shalt.err (!%p1867_p12)
}
  0x3e   :  { %s1871_s5 = scalar_lea.vmem %s106_s28, 1024  ;;  %p1876_p0 = scmp.lt.s32.totalorder %s106_s28, %s106_s28 }
  0x3f   :  { %p1872_p13 = scmp.ne.s32.totalorder %s106_s28, %s1871_s5  ;;  %p1877_p1 = scmp.lt.s32.totalorder %s1871_s5, %s1871_s5 }
  0x41   :  { %p1878_p2 = por %p1877_p1, %p1876_p0 }
  0x43   :  { %p1879_p3 = pnand %p1878_p2, %p1872_p13 }
  0x45   :  { %1882 = shalt.err (!%p1879_p3)
}
  0x46   :  { %111 = dma.hbm_to_vmem [thread:$0]  %s2347_s7, 1024, %s106_s28, [#allocation15], %s2028_s19, %s2028_s19, %s2029_s20  }
  0x47   :  { %s1883_s21 = scalar_lea.hbm %s2340_s0, 128 }
  0x48   :  { %p1884_p4 = scmp.ne.s32.totalorder %s2340_s0, %s1883_s21  ;;  %p1887_p5 = scmp.lt.u32.totalorder %s1883_s21, %s2340_s0 }
  0x4a   :  { %p1889_p6 = pnand %p1887_p5, %p1884_p4 }
  0x4c   :  { %1892 = shalt.err (!%p1889_p6)
}
  0x4d   :  { %s1893_s24 = scalar_lea.vmem %s27_s30, 128  ;;  %p1898_p8 = scmp.lt.s32.totalorder %s27_s30, %s27_s30 }
  0x4e   :  { %p1894_p7 = scmp.ne.s32.totalorder %s27_s30, %s1893_s24  ;;  %p1899_p9 = scmp.lt.s32.totalorder %s1893_s24, %s1893_s24 }
  0x50   :  { %p1900_p10 = por %p1899_p9, %p1898_p8 }
  0x52   :  { %p1901_p11 = pnand %p1900_p10, %p1894_p7 }
  0x54   :  { %1904 = shalt.err (!%p1901_p11)
}
  0x55   :  { %29 = dma.hbm_to_vmem [thread:$0]  %s2340_s0, 128, %s27_s30, [#allocation3]  }
  0x56   :  { %s2034_s20 = smov [#allocation7]   ;;  %s2035_s28 = smov [#allocation10]  }
  0x57   :  { %s48_s27 = sshll.u32 %s2034_s20, 4  ;;  %s69_s29 = sshll.u32 %s2035_s28, 4  ;;  %s49_s27 = int_to_ptr.vmem [resolvable:$true] %s48_s27  ;;  %s70_s29 = int_to_ptr.vmem [resolvable:$true] %s69_s29 }
  0x58   :  { %s1905_s13 = scalar_lea.hbm %s2342_s2, 16 }
  0x59   :  { %p1906_p12 = scmp.ne.s32.totalorder %s2342_s2, %s1905_s13  ;;  %p1909_p13 = scmp.lt.u32.totalorder %s1905_s13, %s2342_s2 }
  0x5b   :  { %p1911_p0 = pnand %p1909_p13, %p1906_p12 }
  0x5d   :  { %1914 = shalt.err (!%p1911_p0)
}
  0x5e   :  { %s1915_s0 = scalar_lea.vmem %s49_s27, 16  ;;  %s1919_s30 = scalar_lea.vmem %s49_s27, 32 }
  0x5f   :  { %p1916_p1 = scmp.ne.s32.totalorder %s49_s27, %s1915_s0  ;;  %p1920_p2 = scmp.lt.s32.totalorder %s49_s27, %s49_s27 }
  0x60   :  { %p1921_p3 = scmp.lt.s32.totalorder %s1919_s30, %s1915_s0 }
  0x62   :  { %p1922_p4 = por %p1921_p3, %p1920_p2 }
  0x64   :  { %p1923_p5 = pnand %p1922_p4, %p1916_p1 }
  0x66   :  { %1926 = shalt.err (!%p1923_p5)
}
  0x67   :  { %51 = dma.hbm_to_vmem [thread:$0]  %s2342_s2, 16, %s49_s27, [#allocation6]  }
  0x68   :  { %s1927_s18 = scalar_lea.hbm %s2344_s4, 64 }
  0x69   :  { %p1928_p6 = scmp.ne.s32.totalorder %s2344_s4, %s1927_s18  ;;  %p1931_p7 = scmp.lt.u32.totalorder %s1927_s18, %s2344_s4 }
  0x6b   :  { %p1933_p8 = pnand %p1931_p7, %p1928_p6 }
  0x6d   :  { %1936 = shalt.err (!%p1933_p8)
}
  0x6e   :  { %s1937_s3 = scalar_lea.vmem %s70_s29, 64  ;;  %p1942_p10 = scmp.lt.s32.totalorder %s70_s29, %s70_s29 }
  0x6f   :  { %p1938_p9 = scmp.ne.s32.totalorder %s70_s29, %s1937_s3  ;;  %p1943_p11 = scmp.lt.s32.totalorder %s1937_s3, %s1937_s3 }
  0x71   :  { %p1944_p12 = por %p1943_p11, %p1942_p10 }
  0x73   :  { %p1945_p13 = pnand %p1944_p12, %p1938_p9 }
  0x75   :  { %1948 = shalt.err (!%p1945_p13)
}
  0x76   :  { %s2036_s2 = smov 16   ;;  %s2037_s24 = smov 1  }
  0x77   :  { %75 = dma.hbm_to_vmem [thread:$0]  %s2344_s4, 64, %s70_s29, [#allocation9], %s2036_s2, %s2036_s2, %s2037_s24  }
  0x78   :  { %s2038_s20 = smov [#allocation13]   ;;  %s2039_s28 = smov [#allocation16]  }
  0x79   :  { %s93_s27 = sshll.u32 %s2038_s20, 4  ;;  %s118_s11 = sshll.u32 %s2039_s28, 4  ;;  %s94_s27 = int_to_ptr.vmem [resolvable:$true] %s93_s27  ;;  %s119_s11 = int_to_ptr.vmem [resolvable:$true] %s118_s11 }
  0x7a   :  { %s1949_s1 = scalar_lea.hbm %s2346_s6, 64 }
  0x7b   :  { %p1950_p0 = scmp.ne.s32.totalorder %s2346_s6, %s1949_s1  ;;  %p1953_p1 = scmp.lt.u32.totalorder %s1949_s1, %s2346_s6 }
  0x7d   :  { %p1955_p2 = pnand %p1953_p1, %p1950_p0 }
  0x7f   :  { %1958 = shalt.err (!%p1955_p2)
}
  0x80   :  { %s1959_s4 = scalar_lea.vmem %s94_s27, 64  ;;  %p1964_p4 = scmp.lt.s32.totalorder %s94_s27, %s94_s27 }
  0x81   :  { %p1960_p3 = scmp.ne.s32.totalorder %s94_s27, %s1959_s4  ;;  %p1965_p5 = scmp.lt.s32.totalorder %s1959_s4, %s1959_s4 }
  0x83   :  { %p1966_p6 = por %p1965_p5, %p1964_p4 }
  0x85   :  { %p1967_p7 = pnand %p1966_p6, %p1960_p3 }
  0x87   :  { %1970 = shalt.err (!%p1967_p7)
}
  0x88   :  { %99 = dma.hbm_to_vmem [thread:$0]  %s2346_s6, 64, %s94_s27, [#allocation12], %s2036_s2, %s2036_s2, %s2037_s24  }
  0x89   :  { %s1971_s16 = scalar_lea.hbm %s2348_s8, 16 }
  0x8a   :  { %p1972_p8 = scmp.ne.s32.totalorder %s2348_s8, %s1971_s16  ;;  %p1975_p9 = scmp.lt.u32.totalorder %s1971_s16, %s2348_s8 }
  0x8c   :  { %p1977_p10 = pnand %p1975_p9, %p1972_p8 }
  0x8e   :  { %1980 = shalt.err (!%p1977_p10)
}
  0x8f   :  { %s1981_s23 = scalar_lea.vmem %s119_s11, 16  ;;  %s1985_s25 = scalar_lea.vmem %s119_s11, 32 }
  0x90   :  { %p1982_p11 = scmp.ne.s32.totalorder %s119_s11, %s1981_s23  ;;  %p1986_p12 = scmp.lt.s32.totalorder %s119_s11, %s119_s11 }
  0x91   :  { %p1987_p13 = scmp.lt.s32.totalorder %s1985_s25, %s1981_s23 }
  0x93   :  { %p1988_p0 = por %p1987_p13, %p1986_p12 }
  0x95   :  { %p1989_p1 = pnand %p1988_p0, %p1982_p11 }
  0x97   :  { %1992 = shalt.err (!%p1989_p1)
}
  0x98   :  { %121 = dma.hbm_to_vmem [thread:$0]  %s2348_s8, 16, %s119_s11, [#allocation15]  }
  0x99   :  { %2015 = dma.done.wait [#allocation3], 128  }
  0x9a   :  { %2016 = vsyncadd [#allocation3], 4294967168 }
  0x9b   :  { %2017 = dma.done.wait [#allocation6], 1040  }
  0x9c   :  { %2018 = vsyncadd [#allocation6], 4294966256 }
  0x9d   :  { %2019 = dma.done.wait [#allocation9], 4160  }
  0x9e   :  { %2020 = vsyncadd [#allocation9], 4294963136 }
  0x9f   :  { %2021 = dma.done.wait [#allocation12], 4160  }
  0xa0   :  { %2022 = vsyncadd [#allocation12], 4294963136 }
  0xa1   :  { %2023 = dma.done.wait [#allocation15], 1040  }
  0xa2   :  { %2024 = vsyncadd [#allocation15], 4294966256  ;;  %v2040_v0 = vmov 0.0   ;;  %vm2041_vm0 = vmmov 0   ;;  %v1715_v1 = vld [vmem:[#allocation5] sm:$0xff]   ;;  %v1716_v2 = vld [vmem:[#allocation5 + $0x8] sm:$0xff]  }
  0xa3   :  { %1499 = vmatprep.subr.bf16.mxu0 %v2040_v0  ;;  %1515 = vmatprep.mubr.msk.bf16.mxu0 %vm2041_vm0, %v2040_v0  ;;  %v1717_v3 = vld [vmem:[#allocation5 + $0x10] sm:$0xff]   ;;  %v1723_v4 = vld [vmem:[#allocation8] sm:$0xff]   ;;  %v1718_v5 = vld [vmem:[#allocation5 + $0x18] sm:$0xff]   ;;  %s2042_s8 = smov [#allocation17]  }
  0xa4   :  { %1519 = vmatprep.subr.bf16.mxu1 %v2040_v0  ;;  %1535 = vmatprep.mubr.msk.bf16.mxu1 %vm2041_vm0, %v2040_v0  ;;  %v1724_v6 = vld [vmem:[#allocation8 + $0x8] sm:$0xff]   ;;  %v1719_v7 = vld [vmem:[#allocation5 + $0x20] sm:$0xff]   ;;  %v1725_v8 = vld [vmem:[#allocation8 + $0x10] sm:$0xff]   ;;  %s1306_s2 = sshll.u32 %s2042_s8, 4  ;;  %s1307_s2 = int_to_ptr.vmem [resolvable:$true] %s1306_s2 }
  0xa5   :  { %1500 = vmatpush3.bf16.msra.mxu0 %v1715_v1  ;;  %1520 = vmatpush3.bf16.msra.mxu1 %v1723_v4  ;;  %v1720_v9 = vld [vmem:[#allocation5 + $0x28] sm:$0xff]   ;;  %v1726_v10 = vld [vmem:[#allocation8 + $0x18] sm:$0xff]   ;;  %v1721_v11 = vld [vmem:[#allocation5 + $0x30] sm:$0xff]   ;;  %s1993_s24 = scalar_lea.vmem %s1307_s2, 128  ;;  %p1998_p3 = scmp.lt.s32.totalorder %s1307_s2, %s1307_s2 }
  0xa6   :  { %1501 = vmatprep.subr.bf16.mxu0 %v2040_v0  ;;  %1521 = vmatprep.subr.bf16.mxu1 %v2040_v0  ;;  %v1727_v12 = vld [vmem:[#allocation8 + $0x20] sm:$0xff]   ;;  %v1722_v13 = vld [vmem:[#allocation5 + $0x38] sm:$0xff]   ;;  %v1728_v15 = vld [vmem:[#allocation8 + $0x28] sm:$0xff]   ;;  %p1994_p2 = scmp.ne.s32.totalorder %s1307_s2, %s1993_s24  ;;  %p1999_p4 = scmp.lt.s32.totalorder %s1993_s24, %s1993_s24 }
  0xa7   :  { %v150_v14 = vld [vmem:[#allocation2] sm:$0xff]  ;;  %v1731_v19 = vld [vmem:[#allocation11] sm:$0xff]   ;;  %v1732_v20 = vld [vmem:[#allocation11 + $0x8] sm:$0xff]  }
  0xa8   :  { %v167_v16 = vpack.c.bf16 %v150_v14, %v150_v14  ;;  %v1729_v17 = vld [vmem:[#allocation8 + $0x30] sm:$0xff]   ;;  %v1730_v18 = vld [vmem:[#allocation8 + $0x38] sm:$0xff]   ;;  %v1735_v23 = vld [vmem:[#allocation11 + $0x20] sm:$0xff]   ;;  %p2000_p5 = por %p1999_p4, %p1998_p3 }
  0xa9   :  { %1502 = vmatpush3.bf16.msra.mxu0 %v1716_v2  ;;  %1522 = vmatpush3.bf16.msra.mxu1 %v1724_v6  ;;  %v1733_v21 = vld [vmem:[#allocation11 + $0x10] sm:$0xff]   ;;  %v1734_v22 = vld [vmem:[#allocation11 + $0x18] sm:$0xff]   ;;  %v1736_v24 = vld [vmem:[#allocation11 + $0x28] sm:$0xff]  }
  0xaa   :  { %1503 = vmatprep.subr.bf16.mxu0 %v2040_v0  ;;  %1523 = vmatprep.subr.bf16.mxu1 %v2040_v0  ;;  %v1319_v25 = vld [vmem:[#allocation7] ss:$0 sm:$0xff]  ;;  %v1737_v32 = vld [vmem:[#allocation11 + $0x30] sm:$0xff]   ;;  %v1739_v34 = vld [vmem:[#allocation8 + $0x40] sm:$0xff]   ;;  %p2001_p6 = pnand %p2000_p5, %p1994_p2 }
  0xab   :  { %v1738_v33 = vld [vmem:[#allocation11 + $0x38] sm:$0xff]   ;;  %v1740_v35 = vld [vmem:[#allocation8 + $0x48] sm:$0xff]   ;;  %v1741_v36 = vld [vmem:[#allocation8 + $0x50] sm:$0xff]  }
  0xac   :  { %v1742_v37 = vld [vmem:[#allocation8 + $0x58] sm:$0xff]   ;;  %v1743_v38 = vld [vmem:[#allocation8 + $0x60] sm:$0xff]   ;;  %v1744_v39 = vld [vmem:[#allocation8 + $0x68] sm:$0xff]  }
  0xad   :  { %1504 = vmatpush3.bf16.msra.mxu0 %v1717_v3  ;;  %1524 = vmatpush3.bf16.msra.mxu1 %v1725_v8  ;;  %v1328_v40 = vld [vmem:[#allocation10] ss:$0 sm:$0xff]  ;;  %v1745_v49 = vld [vmem:[#allocation8 + $0x70] sm:$0xff]   ;;  %v1746_v50 = vld [vmem:[#allocation8 + $0x78] sm:$0xff]  }
  0xae   :  { %1505 = vmatprep.subr.bf16.mxu0 %v2040_v0  ;;  %1525 = vmatprep.subr.bf16.mxu1 %v2040_v0  ;;  %v1747_v51 = vld [vmem:[#allocation11 + $0x40] sm:$0xff]   ;;  %v1748_v52 = vld [vmem:[#allocation11 + $0x48] sm:$0xff]   ;;  %v1749_v53 = vld [vmem:[#allocation11 + $0x50] sm:$0xff]  }
  0xaf   :  { %v1750_v54 = vld [vmem:[#allocation11 + $0x58] sm:$0xff]   ;;  %v1751_v55 = vld [vmem:[#allocation11 + $0x60] sm:$0xff]   ;;  %v1752_v56 = vld [vmem:[#allocation11 + $0x68] sm:$0xff]  }
  0xb0   :  { %v1337_v57 = vld [vmem:[#allocation13] ss:$0 sm:$0xff]  ;;  %v1753_v2 = vld [vmem:[#allocation11 + $0x70] sm:$0xff]   ;;  %v1754_v3 = vld [vmem:[#allocation11 + $0x78] sm:$0xff]  }
  0xb1   :  { %1506 = vmatpush3.bf16.msra.mxu0 %v1718_v5  ;;  %1526 = vmatpush3.bf16.msra.mxu1 %v1726_v10  ;;  %v1755_v4 = vld [vmem:[#allocation8 + $0x80] sm:$0xff]   ;;  %v1756_v5 = vld [vmem:[#allocation8 + $0x88] sm:$0xff]   ;;  %v1757_v6 = vld [vmem:[#allocation8 + $0x90] sm:$0xff]  }
  0xb2   :  { %1507 = vmatprep.subr.bf16.mxu0 %v2040_v0  ;;  %1527 = vmatprep.subr.bf16.mxu1 %v2040_v0  ;;  %v1759_v8 = vld [vmem:[#allocation8 + $0xa0] sm:$0xff]  }
  0xb3   :  { %v1346_v10 = vld [vmem:[#allocation10 + $0x1] ss:$0 sm:$0xff] }
  0xb5   :  { %1508 = vmatpush3.bf16.msra.mxu0 %v1719_v7  ;;  %1528 = vmatpush3.bf16.msra.mxu1 %v1727_v12  ;;  %v1758_v7 = vld [vmem:[#allocation8 + $0x98] sm:$0xff]  }
  0xb6   :  { %1509 = vmatprep.subr.bf16.mxu0 %v2040_v0  ;;  %1529 = vmatprep.subr.bf16.mxu1 %v2040_v0 }
  0xb9   :  { %1510 = vmatpush3.bf16.msra.mxu0 %v1720_v9  ;;  %1530 = vmatpush3.bf16.msra.mxu1 %v1728_v15  ;;  %v1760_v9 = vld [vmem:[#allocation8 + $0xa8] sm:$0xff]  }
  0xba   :  { %1511 = vmatprep.subr.bf16.mxu0 %v2040_v0  ;;  %1531 = vmatprep.subr.bf16.mxu1 %v2040_v0 }
  0xbd   :  { %1512 = vmatpush3.bf16.msra.mxu0 %v1721_v11  ;;  %1532 = vmatpush3.bf16.msra.mxu1 %v1729_v17 }
  0xbe   :  { %1513 = vmatprep.subr.bf16.mxu0 %v2040_v0  ;;  %1533 = vmatprep.subr.bf16.mxu1 %v2040_v0 }
  0xc1   :  { %1514 = vmatpush3.bf16.msra.mxu0 %v1722_v13  ;;  %1534 = vmatpush3.bf16.msra.mxu1 %v1730_v18 }
  0xc2   :  { %1539 = vmatprep.subr.bf16.mxu0 %v2040_v0  ;;  %1559 = vmatprep.subr.bf16.mxu1 %v2040_v0 }
  0xc4   :  { %1516 = vmatmul.mubr.bf16.vlgmr.msra.gmra.mrb[0].mxu0 %v167_v16 }
  0xc5   :  { %1555 = vmatprep.mubr.msk.bf16.mxu0 %vm2041_vm0, %v2040_v0  ;;  %1540 = vmatpush3.bf16.msra.mxu0 %v1731_v19  ;;  %v1761_v19 = vld [vmem:[#allocation8 + $0xb0] sm:$0xff]  }
  0xc6   :  { %1541 = vmatprep.subr.bf16.mxu0 %v2040_v0 }
  0xc9   :  { %1542 = vmatpush3.bf16.msra.mxu0 %v1732_v20  ;;  %v1762_v20 = vld [vmem:[#allocation8 + $0xb8] sm:$0xff]  }
  0xca   :  { %1543 = vmatprep.subr.bf16.mxu0 %v2040_v0 }
  0xcd   :  { %1544 = vmatpush3.bf16.msra.mxu0 %v1733_v21  ;;  %v1763_v21 = vld [vmem:[#allocation11 + $0x80] sm:$0xff]  }
  0xce   :  { %1545 = vmatprep.subr.bf16.mxu0 %v2040_v0 }
  0xd1   :  { %1546 = vmatpush3.bf16.msra.mxu0 %v1734_v22  ;;  %v1764_v22 = vld [vmem:[#allocation11 + $0x88] sm:$0xff]  }
  0xd2   :  { %1547 = vmatprep.subr.bf16.mxu0 %v2040_v0 }
  0xd5   :  { %1548 = vmatpush3.bf16.msra.mxu0 %v1735_v23  ;;  %v1765_v23 = vld [vmem:[#allocation11 + $0x90] sm:$0xff]  }
  0xd6   :  { %1549 = vmatprep.subr.bf16.mxu0 %v2040_v0 }
  0xd9   :  { %1550 = vmatpush3.bf16.msra.mxu0 %v1736_v24  ;;  %v1766_v24 = vld [vmem:[#allocation11 + $0x98] sm:$0xff]  }
  0xda   :  { %1551 = vmatprep.subr.bf16.mxu0 %v2040_v0 }
  0xdd   :  { %1552 = vmatpush3.bf16.msra.mxu0 %v1737_v32 }
  0xde   :  { %1553 = vmatprep.subr.bf16.mxu0 %v2040_v0 }
  0xe1   :  { %1554 = vmatpush3.bf16.msra.mxu0 %v1738_v33 }
  0xe2   :  { %1579 = vmatprep.subr.bf16.mxu0 %v2040_v0 }
 0x197   :  { %v257_v26 = vpop.f32.mrb[0].mxu0 }
 0x198   :  { %v2243_v27 = vadd.f32 %v1319_v25, %v257_v26  ;;  %v1517_v28 = vpop.f32.mrb[1].mxu0  ;;  %v1767_v25 = vld [vmem:[#allocation11 + $0xa0] sm:$0xff]   ;;  %v1768_v26 = vld [vmem:[#allocation11 + $0xa8] sm:$0xff]  }
 0x199   :  { %v260_v29 = vpop.f32.mrb[2].mxu0 }
 0x19a   :  { %v279_v30 = vpack.c.bf16 %v2243_v27, %v2243_v27  ;;  %v1518_v31 = vpop.f32.mrb[3].mxu0 }
 0x19c   :  { %1536 = vmatmul.mubr.bf16.vlgmr.msra.gmra.mrb[0].mxu1 %v279_v30 }
 0x19d   :  { %1575 = vmatprep.mubr.msk.bf16.mxu1 %vm2041_vm0, %v2040_v0  ;;  %1560 = vmatpush3.bf16.msra.mxu1 %v1739_v34 }
 0x19e   :  { %1561 = vmatprep.subr.bf16.mxu1 %v2040_v0 }
 0x1a1   :  { %1562 = vmatpush3.bf16.msra.mxu1 %v1740_v35  ;;  %v1769_v35 = vld [vmem:[#allocation11 + $0xb0] sm:$0xff]  }
 0x1a2   :  { %1563 = vmatprep.subr.bf16.mxu1 %v2040_v0 }
 0x1a5   :  { %1564 = vmatpush3.bf16.msra.mxu1 %v1741_v36  ;;  %v1770_v36 = vld [vmem:[#allocation11 + $0xb8] sm:$0xff]  }
 0x1a6   :  { %1565 = vmatprep.subr.bf16.mxu1 %v2040_v0 }
 0x1a9   :  { %1566 = vmatpush3.bf16.msra.mxu1 %v1742_v37  ;;  %v1771_v37 = vld [vmem:[#allocation8 + $0xc0] sm:$0xff]  }
 0x1aa   :  { %1567 = vmatprep.subr.bf16.mxu1 %v2040_v0 }
 0x1ad   :  { %1568 = vmatpush3.bf16.msra.mxu1 %v1743_v38  ;;  %v1772_v38 = vld [vmem:[#allocation8 + $0xc8] sm:$0xff]  }
 0x1ae   :  { %1569 = vmatprep.subr.bf16.mxu1 %v2040_v0 }
 0x1b1   :  { %1570 = vmatpush3.bf16.msra.mxu1 %v1744_v39  ;;  %v1773_v39 = vld [vmem:[#allocation8 + $0xd0] sm:$0xff]  }
 0x1b2   :  { %1571 = vmatprep.subr.bf16.mxu1 %v2040_v0 }
 0x1b5   :  { %1572 = vmatpush3.bf16.msra.mxu1 %v1745_v49 }
 0x1b6   :  { %1573 = vmatprep.subr.bf16.mxu1 %v2040_v0 }
 0x1b9   :  { %1574 = vmatpush3.bf16.msra.mxu1 %v1746_v50 }
 0x1ba   :  { %1599 = vmatprep.subr.bf16.mxu1 %v2040_v0 }
 0x26f   :  { %v369_v41 = vpop.f32.mrb[0].mxu1 }
 0x270   :  { %v370_v42 = vadd.f32 %v1328_v40, %v369_v41  ;;  %v1537_v43 = vpop.f32.mrb[1].mxu1  ;;  %v1774_v40 = vld [vmem:[#allocation8 + $0xd8] sm:$0xff]   ;;  %v1775_v41 = vld [vmem:[#allocation8 + $0xe0] sm:$0xff]  }
 0x271   :  { %v372_v44 = vpop.f32.mrb[2].mxu1  ;;  %v1364_v43 = vld [vmem:[#allocation10 + $0x2] ss:$0 sm:$0xff] }
 0x272   :  { %vm375_vm1 = vcmp.gt.f32.partialorder %v370_v42, 0.0  ;;  %v376_v45 = vmul.f32 0.01, %v370_v42  ;;  %v1538_v46 = vpop.f32.mrb[3].mxu1 }
 0x274   :  { %v377_v47 = vsel %vm375_vm1, %v370_v42, %v376_v45  ;;  %v1776_v42 = vld [vmem:[#allocation8 + $0xe8] sm:$0xff]  }
 0x275   :  { %v394_v48 = vpack.c.bf16 %v377_v47, %v377_v47 }
 0x277   :  { %1556 = vmatmul.mubr.bf16.vlgmr.msra.gmra.mrb[4].mxu0 %v394_v48 }
 0x278   :  { %1595 = vmatprep.mubr.msk.bf16.mxu0 %vm2041_vm0, %v2040_v0  ;;  %1580 = vmatpush3.bf16.msra.mxu0 %v1747_v51 }
 0x279   :  { %1581 = vmatprep.subr.bf16.mxu0 %v2040_v0 }
 0x27c   :  { %1582 = vmatpush3.bf16.msra.mxu0 %v1748_v52  ;;  %v1777_v52 = vld [vmem:[#allocation8 + $0xf0] sm:$0xff]  }
 0x27d   :  { %1583 = vmatprep.subr.bf16.mxu0 %v2040_v0 }
 0x280   :  { %1584 = vmatpush3.bf16.msra.mxu0 %v1749_v53  ;;  %v1778_v53 = vld [vmem:[#allocation8 + $0xf8] sm:$0xff]  }
 0x281   :  { %1585 = vmatprep.subr.bf16.mxu0 %v2040_v0 }
 0x284   :  { %1586 = vmatpush3.bf16.msra.mxu0 %v1750_v54  ;;  %v1779_v54 = vld [vmem:[#allocation11 + $0xc0] sm:$0xff]  }
 0x285   :  { %1587 = vmatprep.subr.bf16.mxu0 %v2040_v0 }
 0x288   :  { %1588 = vmatpush3.bf16.msra.mxu0 %v1751_v55  ;;  %v1780_v55 = vld [vmem:[#allocation11 + $0xc8] sm:$0xff]  }
 0x289   :  { %1589 = vmatprep.subr.bf16.mxu0 %v2040_v0 }
 0x28c   :  { %1590 = vmatpush3.bf16.msra.mxu0 %v1752_v56  ;;  %v1781_v56 = vld [vmem:[#allocation11 + $0xd0] sm:$0xff]  }
 0x28d   :  { %1591 = vmatprep.subr.bf16.mxu0 %v2040_v0 }
 0x290   :  { %1592 = vmatpush3.bf16.msra.mxu0 %v1753_v2 }
 0x291   :  { %1593 = vmatprep.subr.bf16.mxu0 %v2040_v0 }
 0x294   :  { %1594 = vmatpush3.bf16.msra.mxu0 %v1754_v3 }
 0x295   :  { %1619 = vmatprep.subr.bf16.mxu0 %v2040_v0 }
 0x34a   :  { %v484_v58 = vpop.f32.mrb[4].mxu0 }
 0x34b   :  { %v485_v59 = vadd.f32 %v1337_v57, %v484_v58  ;;  %v1557_v60 = vpop.f32.mrb[5].mxu0  ;;  %v1782_v57 = vld [vmem:[#allocation11 + $0xd8] sm:$0xff]   ;;  %v1783_v58 = vld [vmem:[#allocation11 + $0xe0] sm:$0xff]  }
 0x34c   :  { %v487_v61 = vpop.f32.mrb[6].mxu0  ;;  %v1373_v60 = vld [vmem:[#allocation13 + $0x2] ss:$0 sm:$0xff] }
 0x34d   :  { %v2268_v62 = vadd.f32 %v485_v59, %v2243_v27  ;;  %v1558_v63 = vpop.f32.mrb[7].mxu0  ;;  %v1355_v27 = vld [vmem:[#allocation13 + $0x1] ss:$0 sm:$0xff]  ;;  %v1784_v59 = vld [vmem:[#allocation11 + $0xe8] sm:$0xff]  }
 0x34f   :  { %v508_v1 = vpack.c.bf16 %v2268_v62, %v2268_v62 }
 0x351   :  { %1576 = vmatmul.mubr.bf16.vlgmr.msra.gmra.mrb[4].mxu1 %v508_v1 }
 0x352   :  { %1615 = vmatprep.mubr.msk.bf16.mxu1 %vm2041_vm0, %v2040_v0  ;;  %1600 = vmatpush3.bf16.msra.mxu1 %v1755_v4 }
 0x353   :  { %1601 = vmatprep.subr.bf16.mxu1 %v2040_v0 }
 0x356   :  { %1602 = vmatpush3.bf16.msra.mxu1 %v1756_v5  ;;  %v1785_v5 = vld [vmem:[#allocation11 + $0xf0] sm:$0xff]  }
 0x357   :  { %1603 = vmatprep.subr.bf16.mxu1 %v2040_v0 }
 0x35a   :  { %1604 = vmatpush3.bf16.msra.mxu1 %v1757_v6  ;;  %v1786_v6 = vld [vmem:[#allocation11 + $0xf8] sm:$0xff]  }
 0x35b   :  { %1605 = vmatprep.subr.bf16.mxu1 %v2040_v0 }
 0x35e   :  { %1606 = vmatpush3.bf16.msra.mxu1 %v1758_v7  ;;  %v1787_v7 = vld [vmem:[#allocation14] sm:$0xff]  }
 0x35f   :  { %1607 = vmatprep.subr.bf16.mxu1 %v2040_v0 }
 0x362   :  { %1608 = vmatpush3.bf16.msra.mxu1 %v1759_v8  ;;  %v1788_v8 = vld [vmem:[#allocation14 + $0x8] sm:$0xff]  }
 0x363   :  { %1609 = vmatprep.subr.bf16.mxu1 %v2040_v0 }
 0x366   :  { %1610 = vmatpush3.bf16.msra.mxu1 %v1760_v9  ;;  %v1789_v9 = vld [vmem:[#allocation14 + $0x10] sm:$0xff]  }
 0x367   :  { %1611 = vmatprep.subr.bf16.mxu1 %v2040_v0 }
 0x36a   :  { %1612 = vmatpush3.bf16.msra.mxu1 %v1761_v19 }
 0x36b   :  { %1613 = vmatprep.subr.bf16.mxu1 %v2040_v0 }
 0x36e   :  { %1614 = vmatpush3.bf16.msra.mxu1 %v1762_v20 }
 0x36f   :  { %1639 = vmatprep.subr.bf16.mxu1 %v2040_v0 }
 0x424   :  { %v599_v11 = vpop.f32.mrb[4].mxu1 }
 0x425   :  { %v600_v12 = vadd.f32 %v1346_v10, %v599_v11  ;;  %v1577_v13 = vpop.f32.mrb[5].mxu1  ;;  %v1790_v10 = vld [vmem:[#allocation14 + $0x18] sm:$0xff]   ;;  %v1791_v11 = vld [vmem:[#allocation14 + $0x20] sm:$0xff]  }
 0x426   :  { %v602_v14 = vpop.f32.mrb[6].mxu1  ;;  %v1382_v13 = vld [vmem:[#allocation10 + $0x3] ss:$0 sm:$0xff] }
 0x427   :  { %vm605_vm2 = vcmp.gt.f32.partialorder %v600_v12, 0.0  ;;  %v606_v15 = vmul.f32 0.01, %v600_v12  ;;  %v1578_v16 = vpop.f32.mrb[7].mxu1 }
 0x429   :  { %v607_v17 = vsel %vm605_vm2, %v600_v12, %v606_v15  ;;  %v1792_v12 = vld [vmem:[#allocation14 + $0x28] sm:$0xff]  }
 0x42a   :  { %v625_v18 = vpack.c.bf16 %v607_v17, %v607_v17 }
 0x42c   :  { %1596 = vmatmul.mubr.bf16.vlgmr.msra.gmra.mrb[8].mxu0 %v625_v18 }
 0x42d   :  { %1635 = vmatprep.mubr.msk.bf16.mxu0 %vm2041_vm0, %v2040_v0  ;;  %1620 = vmatpush3.bf16.msra.mxu0 %v1763_v21 }
 0x42e   :  { %1621 = vmatprep.subr.bf16.mxu0 %v2040_v0 }
 0x431   :  { %1622 = vmatpush3.bf16.msra.mxu0 %v1764_v22  ;;  %v1793_v22 = vld [vmem:[#allocation14 + $0x30] sm:$0xff]  }
 0x432   :  { %1623 = vmatprep.subr.bf16.mxu0 %v2040_v0 }
 0x435   :  { %1624 = vmatpush3.bf16.msra.mxu0 %v1765_v23  ;;  %v1794_v23 = vld [vmem:[#allocation14 + $0x38] sm:$0xff]  }
 0x436   :  { %1625 = vmatprep.subr.bf16.mxu0 %v2040_v0 }
 0x439   :  { %1626 = vmatpush3.bf16.msra.mxu0 %v1766_v24  ;;  %v1391_v24 = vld [vmem:[#allocation13 + $0x3] ss:$0 sm:$0xff] }
 0x43a   :  { %1627 = vmatprep.subr.bf16.mxu0 %v2040_v0 }
 0x43d   :  { %1628 = vmatpush3.bf16.msra.mxu0 %v1767_v25 }
 0x43e   :  { %1629 = vmatprep.subr.bf16.mxu0 %v2040_v0 }
 0x441   :  { %1630 = vmatpush3.bf16.msra.mxu0 %v1768_v26 }
 0x442   :  { %1631 = vmatprep.subr.bf16.mxu0 %v2040_v0 }
 0x445   :  { %1632 = vmatpush3.bf16.msra.mxu0 %v1769_v35 }
 0x446   :  { %1633 = vmatprep.subr.bf16.mxu0 %v2040_v0 }
 0x449   :  { %1634 = vmatpush3.bf16.msra.mxu0 %v1770_v36 }
 0x44a   :  { %1659 = vmatprep.subr.bf16.mxu0 %v2040_v0 }
 0x4ff   :  { %v716_v28 = vpop.f32.mrb[8].mxu0 }
 0x500   :  { %v717_v29 = vadd.f32 %v1355_v27, %v716_v28  ;;  %v1597_v30 = vpop.f32.mrb[9].mxu0 }
 0x501   :  { %v719_v31 = vpop.f32.mrb[10].mxu0 }
 0x502   :  { %v2293_v32 = vadd.f32 %v717_v29, %v2268_v62  ;;  %v1598_v33 = vpop.f32.mrb[11].mxu0 }
 0x504   :  { %v740_v34 = vpack.c.bf16 %v2293_v32, %v2293_v32 }
 0x506   :  { %1616 = vmatmul.mubr.bf16.vlgmr.msra.gmra.mrb[8].mxu1 %v740_v34 }
 0x507   :  { %1655 = vmatprep.mubr.msk.bf16.mxu1 %vm2041_vm0, %v2040_v0  ;;  %1640 = vmatpush3.bf16.msra.mxu1 %v1771_v37 }
 0x508   :  { %1641 = vmatprep.subr.bf16.mxu1 %v2040_v0 }
 0x50b   :  { %1642 = vmatpush3.bf16.msra.mxu1 %v1772_v38 }
 0x50c   :  { %1643 = vmatprep.subr.bf16.mxu1 %v2040_v0 }
 0x50f   :  { %1644 = vmatpush3.bf16.msra.mxu1 %v1773_v39 }
 0x510   :  { %1645 = vmatprep.subr.bf16.mxu1 %v2040_v0 }
 0x513   :  { %1646 = vmatpush3.bf16.msra.mxu1 %v1774_v40 }
 0x514   :  { %1647 = vmatprep.subr.bf16.mxu1 %v2040_v0 }
 0x517   :  { %1648 = vmatpush3.bf16.msra.mxu1 %v1775_v41 }
 0x518   :  { %1649 = vmatprep.subr.bf16.mxu1 %v2040_v0 }
 0x51b   :  { %1650 = vmatpush3.bf16.msra.mxu1 %v1776_v42 }
 0x51c   :  { %1651 = vmatprep.subr.bf16.mxu1 %v2040_v0 }
 0x51f   :  { %1652 = vmatpush3.bf16.msra.mxu1 %v1777_v52 }
 0x520   :  { %1653 = vmatprep.subr.bf16.mxu1 %v2040_v0 }
 0x523   :  { %1654 = vmatpush3.bf16.msra.mxu1 %v1778_v53 }
 0x524   :  { %1679 = vmatprep.subr.bf16.mxu1 %v2040_v0 }
 0x5d9   :  { %v831_v44 = vpop.f32.mrb[8].mxu1 }
 0x5da   :  { %v832_v45 = vadd.f32 %v1364_v43, %v831_v44  ;;  %v1617_v46 = vpop.f32.mrb[9].mxu1 }
 0x5db   :  { %v834_v47 = vpop.f32.mrb[10].mxu1 }
 0x5dc   :  { %vm837_vm3 = vcmp.gt.f32.partialorder %v832_v45, 0.0  ;;  %v838_v48 = vmul.f32 0.01, %v832_v45  ;;  %v1618_v49 = vpop.f32.mrb[11].mxu1 }
 0x5de   :  { %v839_v50 = vsel %vm837_vm3, %v832_v45, %v838_v48 }
 0x5df   :  { %v857_v51 = vpack.c.bf16 %v839_v50, %v839_v50 }
 0x5e1   :  { %1636 = vmatmul.mubr.bf16.vlgmr.msra.gmra.mrb[12].mxu0 %v857_v51 }
 0x5e2   :  { %1675 = vmatprep.mubr.msk.bf16.mxu0 %vm2041_vm0, %v2040_v0  ;;  %1660 = vmatpush3.bf16.msra.mxu0 %v1779_v54 }
 0x5e3   :  { %1661 = vmatprep.subr.bf16.mxu0 %v2040_v0 }
 0x5e6   :  { %1662 = vmatpush3.bf16.msra.mxu0 %v1780_v55 }
 0x5e7   :  { %1663 = vmatprep.subr.bf16.mxu0 %v2040_v0 }
 0x5ea   :  { %1664 = vmatpush3.bf16.msra.mxu0 %v1781_v56 }
 0x5eb   :  { %1665 = vmatprep.subr.bf16.mxu0 %v2040_v0 }
 0x5ee   :  { %1666 = vmatpush3.bf16.msra.mxu0 %v1782_v57 }
 0x5ef   :  { %1667 = vmatprep.subr.bf16.mxu0 %v2040_v0 }
 0x5f2   :  { %1668 = vmatpush3.bf16.msra.mxu0 %v1783_v58 }
 0x5f3   :  { %1669 = vmatprep.subr.bf16.mxu0 %v2040_v0 }
 0x5f6   :  { %1670 = vmatpush3.bf16.msra.mxu0 %v1784_v59 }
 0x5f7   :  { %1671 = vmatprep.subr.bf16.mxu0 %v2040_v0 }
 0x5fa   :  { %1672 = vmatpush3.bf16.msra.mxu0 %v1785_v5 }
 0x5fb   :  { %1673 = vmatprep.subr.bf16.mxu0 %v2040_v0 }
 0x5fe   :  { %1674 = vmatpush3.bf16.msra.mxu0 %v1786_v6 }
 0x6b4   :  { %v948_v61 = vpop.f32.mrb[12].mxu0 }
 0x6b5   :  { %v949_v62 = vadd.f32 %v1373_v60, %v948_v61  ;;  %v1637_v63 = vpop.f32.mrb[13].mxu0 }
 0x6b6   :  { %v951_v1 = vpop.f32.mrb[14].mxu0 }
 0x6b7   :  { %v954_v2 = vadd.f32 %v949_v62, %v2293_v32  ;;  %v1638_v3 = vpop.f32.mrb[15].mxu0  ;;  %v1400_v32 = vld [vmem:[#allocation16] ss:$0 sm:$0xff] }
 0x6b9   :  { %v972_v4 = vpack.c.bf16 %v954_v2, %v954_v2 }
 0x6bb   :  { %1656 = vmatmul.mubr.bf16.vlgmr.msra.gmra.mrb[12].mxu1 %v972_v4 }
 0x6bc   :  { %1695 = vmatprep.mubr.msk.bf16.mxu1 %vm2041_vm0, %v2040_v0  ;;  %1680 = vmatpush3.bf16.msra.mxu1 %v1787_v7 }
 0x6bd   :  { %1681 = vmatprep.subr.bf16.mxu1 %v2040_v0 }
 0x6c0   :  { %1682 = vmatpush3.bf16.msra.mxu1 %v1788_v8 }
 0x6c1   :  { %1683 = vmatprep.subr.bf16.mxu1 %v2040_v0 }
 0x6c4   :  { %1684 = vmatpush3.bf16.msra.mxu1 %v1789_v9 }
 0x6c5   :  { %1685 = vmatprep.subr.bf16.mxu1 %v2040_v0 }
 0x6c8   :  { %1686 = vmatpush3.bf16.msra.mxu1 %v1790_v10 }
 0x6c9   :  { %1687 = vmatprep.subr.bf16.mxu1 %v2040_v0 }
 0x6cc   :  { %1688 = vmatpush3.bf16.msra.mxu1 %v1791_v11 }
 0x6cd   :  { %1689 = vmatprep.subr.bf16.mxu1 %v2040_v0 }
 0x6d0   :  { %1690 = vmatpush3.bf16.msra.mxu1 %v1792_v12 }
 0x6d1   :  { %1691 = vmatprep.subr.bf16.mxu1 %v2040_v0 }
 0x6d4   :  { %1692 = vmatpush3.bf16.msra.mxu1 %v1793_v22 }
 0x6d5   :  { %1693 = vmatprep.subr.bf16.mxu1 %v2040_v0 }
 0x6d8   :  { %1694 = vmatpush3.bf16.msra.mxu1 %v1794_v23 }
 0x78e   :  { %v1063_v14 = vpop.f32.mrb[12].mxu1 }
 0x78f   :  { %v1064_v15 = vadd.f32 %v1382_v13, %v1063_v14  ;;  %v1657_v16 = vpop.f32.mrb[13].mxu1 }
 0x790   :  { %v1066_v17 = vpop.f32.mrb[14].mxu1 }
 0x791   :  { %vm1069_vm4 = vcmp.gt.f32.partialorder %v1064_v15, 0.0  ;;  %v1070_v18 = vmul.f32 0.01, %v1064_v15  ;;  %v1658_v19 = vpop.f32.mrb[15].mxu1 }
 0x793   :  { %v1071_v20 = vsel %vm1069_vm4, %v1064_v15, %v1070_v18 }
 0x794   :  { %v1089_v21 = vpack.c.bf16 %v1071_v20, %v1071_v20 }
 0x796   :  { %1676 = vmatmul.mubr.bf16.vlgmr.msra.gmra.mrb[16].mxu0 %v1089_v21 }
 0x869   :  { %v1180_v25 = vpop.f32.mrb[16].mxu0 }
 0x86a   :  { %v1181_v26 = vadd.f32 %v1391_v24, %v1180_v25  ;;  %v1677_v27 = vpop.f32.mrb[17].mxu0 }
 0x86b   :  { %v1183_v28 = vpop.f32.mrb[18].mxu0 }
 0x86c   :  { %v1186_v29 = vadd.f32 %v1181_v26, %v954_v2  ;;  %v1678_v30 = vpop.f32.mrb[19].mxu0 }
 0x86e   :  { %v1203_v31 = vpack.c.bf16 %v1186_v29, %v1186_v29 }
 0x870   :  { %1696 = vmatmul.mubr.bf16.vlgmr.msra.gmra.mrb[16].mxu1 %v1203_v31 }
 0x943   :  { %v1293_v33 = vpop.f32.mrb[16].mxu1 }
 0x944   :  { %v1294_v34 = vadd.f32 %v1400_v32, %v1293_v33  ;;  %v1697_v35 = vpop.f32.mrb[17].mxu1 }
 0x945   :  { %v1296_v36 = vpop.f32.mrb[18].mxu1 }
 0x946   :  { %1299 = vst [vmem:[#allocation17] sm:$0xff] %v1294_v34  ;;  %v1698_v0 = vpop.f32.mrb[19].mxu1 }
 0x947   :  { %2004 = shalt.err (!%p2001_p6)
}
 0x948   :  { %s2005_s20 = scalar_lea.hbm %s2349_s9, 128 }
 0x949   :  { %p2006_p7 = scmp.ne.s32.totalorder %s2349_s9, %s2005_s20  ;;  %p2009_p8 = scmp.lt.u32.totalorder %s2005_s20, %s2349_s9 }
 0x94b   :  { %p2011_p9 = pnand %p2009_p8, %p2006_p7 }
 0x94d   :  { %2014 = shalt.err (!%p2011_p9)
}
 0x94e   :  { %1309 = dma.vmem_to_hbm [thread:$0]  %s1307_s2, 128, %s2349_s9, [#allocation4]  }
 0x94f   :  { %2025 = dma.done.wait [#allocation4], 128  }
 0x950   :  { %2026 = vsyncadd [#allocation4], 4294967168 }
 0x951   :  { %1313 = vsyncpa [#allocation3], 1 }
 0x952   :  { %1314 = vsyncpa [#allocation6], 1 }
 0x953   :  { %1315 = vsyncpa [#allocation9], 1 }
 0x954   :  { %1316 = vsyncpa [#allocation12], 1 }
 0x955   :  { %1317 = vsyncpa [#allocation15], 1 }
 0x956   :  { %1318 = vsyncpa [#allocation4], 1 }

</bundles_post_ra>
